<compile_context>
chip_gen: v7x
topology: tpu7x:2x2x1
jax: 0.10.0
libtpu: 0.0.40
codegen_flags: <defaults>
</compile_context>

<pallas_src>
import functools

import jax
import jax.numpy as jnp
from jax.experimental import pallas as pl
from jax.experimental.pallas import tpu as pltpu

EPS = 1e-5
LANE = 128      # vreg lane width   (last dim)
SUBLANE = 8     # vreg sublane width (second-to-last dim)


def _round_up(n, m):
    return (n + m - 1) // m * m


def _vmem_limit_bytes():
    # Generation-aware scoped-VMEM budget: half of physical VMEM
    # (64 MiB on v5e/v6e's 128 MiB, 32 MiB on v7x's 64 MiB per TensorCore).
    try:
        cap = int(pltpu.get_tpu_info().vmem_capacity_bytes)
        return cap // 2
    except Exception:
        return 32 * 1024 * 1024   # v7x-safe fallback


# ----------------------------------------------------------------------------
# Kernel
# ----------------------------------------------------------------------------
def projection_mlp_kernel(x_ref, w1_ref, w2_ref, w3_ref, vec_ref, o_ref,
                          *, n_valid, hp, op):
    # Row-validity mask: padded batch rows must not contaminate BN statistics.
    rows = jax.lax.broadcasted_iota(jnp.int32, (x_ref.shape[0], 1), 0)
    mask = (rows < n_valid).astype(jnp.float32)
    inv_n = 1.0 / n_valid

    # Packed per-feature vectors: rows = [g1, be1, g2, be2, b3] (one DMA).
    g1, be1 = vec_ref[0:1, :hp], vec_ref[1:2, :hp]
    g2, be2 = vec_ref[2:3, :hp], vec_ref[3:4, :hp]
    b3 = vec_ref[4:5, :op]

    def bn_relu(h, g, be):
        # Single-pass training-mode BatchNorm1d: biased var = E[h^2] - mu^2
        # over *valid* rows only (clamped >= 0 against cancellation), folded
        # with gamma/beta into one scale/shift and fused with ReLU (one VPU
        # pass).  Padded feature columns have gamma == 0 -> scale == 0 there.
        hm = h * mask
        s = jnp.sum(hm, axis=0, keepdims=True)
        sq = jnp.sum(hm * hm, axis=0, keepdims=True)
        mu = s * inv_n
        var = jnp.maximum(sq * inv_n - mu * mu, 0.0)
        scale = g * jax.lax.rsqrt(var + EPS)
        shift = be - mu * scale
        return jnp.maximum(h * scale + shift, 0.0)

    # Linear biases b1/b2 are omitted on purpose: a bias feeding training-mode
    # BatchNorm is exactly cancelled by the mean subtraction.
    x = x_ref[...]                                             # bf16 [Bp, Kp]
    h = jnp.dot(x, w1_ref[...], preferred_element_type=jnp.float32)
    h = bn_relu(h, g1, be1)
    h = jnp.dot(h.astype(jnp.bfloat16), w2_ref[...],
                preferred_element_type=jnp.float32)
    h = bn_relu(h, g2, be2)
    o_ref[...] = jnp.dot(h.astype(jnp.bfloat16), w3_ref[...],
                         preferred_element_type=jnp.float32) + b3


# ----------------------------------------------------------------------------
# One-time parameter preparation (hoisted off the per-call path)
# ----------------------------------------------------------------------------
def prepare_params(params):
    """Pad weights to lane multiples, cast to bf16, and pack the per-feature
    vectors into a single lane-dense f32 buffer.  Call once; the per-step
    forward only pads/casts the activation x."""
    K, H = params["w1"].shape
    O = params["w3"].shape[1]
    Kp, Hp, Op = _round_up(K, LANE), _round_up(H, LANE), _round_up(O, LANE)
    maxw = max(Hp, Op)

    def pad2(a, r, c):
        return jnp.pad(a, ((0, r - a.shape[0]), (0, c - a.shape[1])))

    w1 = pad2(params["w1"], Kp, Hp).astype(jnp.bfloat16)
    w2 = pad2(params["w2"], Hp, Hp).astype(jnp.bfloat16)
    w3 = pad2(params["w3"], Hp, Op).astype(jnp.bfloat16)

    # Rows: [gamma1, beta1, gamma2, beta2, b3, 0, 0, 0]; padded entries stay 0
    # so padded feature columns get BN scale == 0 inside the kernel.
    vec = jnp.zeros((SUBLANE, maxw), jnp.float32)
    vec = vec.at[0, :H].set(params["g1"].reshape(-1))
    vec = vec.at[1, :H].set(params["be1"].reshape(-1))
    vec = vec.at[2, :H].set(params["g2"].reshape(-1))
    vec = vec.at[3, :H].set(params["be2"].reshape(-1))
    vec = vec.at[4, :O].set(params["b3"].reshape(-1))

    return {"w1": w1, "w2": w2, "w3": w3, "vec": vec}


# ----------------------------------------------------------------------------
# Forward wrapper
# ----------------------------------------------------------------------------
def projection_mlp(x, w1, w2, w3, vec, *, out_dim):
    """x: [B, ...] flattened to [B, input_dim] (matching x.view(B, -1)).
    w1/w2/w3/vec come pre-padded + pre-cast from prepare_params()."""
    B = x.shape[0]
    x2 = x.reshape(B, -1)
    K = x2.shape[1]
    Kp, Hp = w1.shape
    Op = w3.shape[1]
    assert K <= Kp and out_dim <= Op and Hp == w2.shape[0]
    Bp = _round_up(B, SUBLANE)

    # Only per-call data prep: pad + cast the activation.
    x_p = jnp.pad(x2.astype(jnp.float32),
                  ((0, Bp - B), (0, Kp - K))).astype(jnp.bfloat16)

    flops = 2 * Bp * (Kp * Hp + Hp * Hp + Hp * Op)
    bytes_accessed = (x_p.size * 2 + w1.size * 2 + w2.size * 2 + w3.size * 2
                      + vec.size * 4 + Bp * Op * 4)

    vmem = lambda: pl.BlockSpec(memory_space=pltpu.MemorySpace.VMEM)
    out_p = pl.pallas_call(
        functools.partial(projection_mlp_kernel, n_valid=B, hp=Hp, op=Op),
        out_shape=jax.ShapeDtypeStruct((Bp, Op), jnp.float32),
        in_specs=[vmem() for _ in range(5)],
        out_specs=vmem(),
        cost_estimate=pl.CostEstimate(flops=flops,
                                      transcendentals=2 * Hp,
                                      bytes_accessed=bytes_accessed),
        compiler_params=pltpu.CompilerParams(
            vmem_limit_bytes=_vmem_limit_bytes()),
    )(x_p, w1, w2, w3, vec)
    return out_p[:B, :out_dim]


# ----------------------------------------------------------------------------
# Init + references
# ----------------------------------------------------------------------------
def init_params(key, input_dim, hidden_dim, output_dim):
    """Deterministic init mimicking nn.Linear default (U(-1/sqrt(fan_in), .))."""
    ks = jax.random.split(key, 6)

    def lin(kw, kb, fan_in, fan_out):
        bound = 1.0 / jnp.sqrt(fan_in)
        w = jax.random.uniform(kw, (fan_in, fan_out), jnp.float32, -bound, bound)
        b = jax.random.uniform(kb, (1, fan_out), jnp.float32, -bound, bound)
        return w, b

    w1, b1 = lin(ks[0], ks[1], input_dim, hidden_dim)
    w2, b2 = lin(ks[2], ks[3], hidden_dim, hidden_dim)
    w3, b3 = lin(ks[4], ks[5], hidden_dim, output_dim)

    ones = lambda n: jnp.ones((1, n), jnp.float32)
    zeros = lambda n: jnp.zeros((1, n), jnp.float32)
    return {
        "w1": w1, "b1": b1, "g1": ones(hidden_dim), "be1": zeros(hidden_dim),
        "w2": w2, "b2": b2, "g2": ones(hidden_dim), "be2": zeros(hidden_dim),
        "w3": w3, "b3": b3,
    }


def reference_forward(x, p, mm_dtype=jnp.float32):
    """Pure-JAX PyTorch-semantics reference (training-mode BN, includes b1/b2).
    mm_dtype=bf16 emulates the kernel's matmul operand casts."""
    B = x.shape[0]
    h = x.reshape(B, -1).astype(jnp.float32)

    def lin(h, w, b):
        return jnp.dot(h.astype(mm_dtype), w.astype(mm_dtype),
                       preferred_element_type=jnp.float32) + b

    def bn_relu(h, g, be):
        mu = h.mean(0, keepdims=True)
        var = ((h - mu) ** 2).mean(0, keepdims=True)
        return jnp.maximum((h - mu) * jax.lax.rsqrt(var + EPS) * g + be, 0.0)

    h = bn_relu(lin(h, p["w1"], p["b1"]), p["g1"], p["be1"])
    h = bn_relu(lin(h, p["w2"], p["b2"]), p["g2"], p["be2"])
    return lin(h, p["w3"], p["b3"])


# ----------------------------------------------------------------------------
if __name__ == "__main__":
    key = jax.random.PRNGKey(0)
    kx, kp = jax.random.split(key)

    # Image-like input flattened to input_dim = 4 * 16 * 16 = 1024.  B=6 (not
    # a sublane multiple) exercises batch-padding + the BN row mask.
    B, C, Hs, Ws = 6, 4, 16, 16
    input_dim, hidden_dim, output_dim = C * Hs * Ws, 32, 16

    x = jax.random.normal(kx, (B, C, Hs, Ws), jnp.float32)
    params = init_params(kp, input_dim, hidden_dim, output_dim)

    # One-time weight prep (padding / bf16 cast / vector packing).
    prep = prepare_params(params)

    run = jax.jit(projection_mlp, static_argnames=("out_dim",))
    out = jax.block_until_ready(
        run(x, prep["w1"], prep["w2"], prep["w3"], prep["vec"],
            out_dim=output_dim))
    assert out.shape == (B, output_dim)

    # Tight check vs a reference that mimics the kernel's bf16 matmul inputs
    # (b1/b2 are present in the reference but exactly cancelled by BN).
    ref_bf16 = reference_forward(x, params, mm_dtype=jnp.bfloat16)
    assert jnp.allclose(out, ref_bf16, atol=2e-2, rtol=2e-2), \
        "mismatch vs bf16-matmul reference"

    # Looser sanity check vs the exact f32 (PyTorch-semantics) reference;
    # drift here is purely the bf16 weight/activation cast.
    ref_f32 = reference_forward(x, params, mm_dtype=jnp.float32)
    assert jnp.allclose(out, ref_f32, atol=1e-1, rtol=1e-1), \
        "mismatch vs f32 reference"

    print("KERNEL_OK")
</pallas_src>

<mosaic_0001>
module attributes {stable_mosaic.version = 11 : i64} {
  func.func @projection_mlp_kernel(%arg0: memref<8x1024xbf16, #tpu.memory_space<vmem>>, %arg1: memref<1024x128xbf16, #tpu.memory_space<vmem>>, %arg2: memref<128x128xbf16, #tpu.memory_space<vmem>>, %arg3: memref<128x128xbf16, #tpu.memory_space<vmem>>, %arg4: memref<8x128xf32, #tpu.memory_space<vmem>>, %arg5: memref<8x128xf32, #tpu.memory_space<vmem>>) attributes {dimension_semantics = [], scalar_prefetch = 0 : i64, scratch_operands = 0 : i64, tpu.core_type = #tpu.core_type<tc>} {
    %0 = tpu.iota {dimensions = array<i32: 0>} : vector<8x1xi32>
    %c6_i32 = arith.constant 6 : i32
    %1 = vector.broadcast %c6_i32 : i32 to vector<8x1xi32>
    %2 = arith.cmpi slt, %0, %1 : vector<8x1xi32>
    %3 = arith.extui %2 : vector<8x1xi1> to vector<8x1xi32>
    %4 = arith.sitofp %3 : vector<8x1xi32> to vector<8x1xf32>
    %c0 = arith.constant 0 : index
    %c0_0 = arith.constant 0 : index
    %5 = vector.load %arg4[%c0, %c0_0] : memref<8x128xf32, #tpu.memory_space<vmem>>, vector<1x128xf32>
    %c1 = arith.constant 1 : index
    %c0_1 = arith.constant 0 : index
    %6 = vector.load %arg4[%c1, %c0_1] : memref<8x128xf32, #tpu.memory_space<vmem>>, vector<1x128xf32>
    %c2 = arith.constant 2 : index
    %c0_2 = arith.constant 0 : index
    %7 = vector.load %arg4[%c2, %c0_2] : memref<8x128xf32, #tpu.memory_space<vmem>>, vector<1x128xf32>
    %c3 = arith.constant 3 : index
    %c0_3 = arith.constant 0 : index
    %8 = vector.load %arg4[%c3, %c0_3] : memref<8x128xf32, #tpu.memory_space<vmem>>, vector<1x128xf32>
    %c4 = arith.constant 4 : index
    %c0_4 = arith.constant 0 : index
    %9 = vector.load %arg4[%c4, %c0_4] : memref<8x128xf32, #tpu.memory_space<vmem>>, vector<1x128xf32>
    %c0_5 = arith.constant 0 : index
    %c0_6 = arith.constant 0 : index
    %10 = vector.load %arg0[%c0_5, %c0_6] : memref<8x1024xbf16, #tpu.memory_space<vmem>>, vector<8x1024xbf16>
    %c0_7 = arith.constant 0 : index
    %c0_8 = arith.constant 0 : index
    %11 = vector.load %arg1[%c0_7, %c0_8] : memref<1024x128xbf16, #tpu.memory_space<vmem>>, vector<1024x128xbf16>
    %cst = arith.constant dense<0.000000e+00> : vector<8x128xf32>
    %12 = tpu.matmul %10, %11, %cst {dimension_numbers = #tpu.dot_dimension_numbers<[1], [0], [0], [1], [0, 0, 1, 1], [], []>} : vector<8x1024xbf16>, vector<1024x128xbf16>, vector<8x128xf32> -> vector<8x128xf32>
    %13 = vector.broadcast %4 : vector<8x1xf32> to vector<8x128xf32>
    %14 = arith.mulf %12, %13 : vector<8x128xf32>
    %cst_9 = arith.constant dense<0.000000e+00> : vector<128xf32>
    %15 = vector.multi_reduction <add>, %14, %cst_9 [0] : vector<8x128xf32> to vector<128xf32>
    %16 = vector.shape_cast %15 : vector<128xf32> to vector<1x128xf32>
    %17 = arith.mulf %14, %14 : vector<8x128xf32>
    %cst_10 = arith.constant dense<0.000000e+00> : vector<128xf32>
    %18 = vector.multi_reduction <add>, %17, %cst_10 [0] : vector<8x128xf32> to vector<128xf32>
    %19 = vector.shape_cast %18 : vector<128xf32> to vector<1x128xf32>
    %cst_11 = arith.constant 0.166666672 : f32
    %20 = vector.broadcast %cst_11 : f32 to vector<1x128xf32>
    %21 = arith.mulf %16, %20 : vector<1x128xf32>
    %cst_12 = arith.constant 0.166666672 : f32
    %22 = vector.broadcast %cst_12 : f32 to vector<1x128xf32>
    %23 = arith.mulf %19, %22 : vector<1x128xf32>
    %24 = arith.mulf %21, %21 : vector<1x128xf32>
    %25 = arith.subf %23, %24 : vector<1x128xf32>
    %cst_13 = arith.constant 0.000000e+00 : f32
    %26 = vector.broadcast %cst_13 : f32 to vector<1x128xf32>
    %27 = arith.maximumf %25, %26 : vector<1x128xf32>
    %cst_14 = arith.constant 9.99999974E-6 : f32
    %28 = vector.broadcast %cst_14 : f32 to vector<1x128xf32>
    %29 = arith.addf %27, %28 : vector<1x128xf32>
    %30 = math.rsqrt %29 : vector<1x128xf32>
    %31 = arith.mulf %5, %30 : vector<1x128xf32>
    %32 = arith.mulf %21, %31 : vector<1x128xf32>
    %33 = arith.subf %6, %32 : vector<1x128xf32>
    %34 = vector.broadcast %31 : vector<1x128xf32> to vector<8x128xf32>
    %35 = arith.mulf %12, %34 : vector<8x128xf32>
    %36 = vector.broadcast %33 : vector<1x128xf32> to vector<8x128xf32>
    %37 = arith.addf %35, %36 : vector<8x128xf32>
    %cst_15 = arith.constant 0.000000e+00 : f32
    %38 = vector.broadcast %cst_15 : f32 to vector<8x128xf32>
    %39 = arith.maximumf %37, %38 : vector<8x128xf32>
    %40 = arith.truncf %39 : vector<8x128xf32> to vector<8x128xbf16>
    %c0_16 = arith.constant 0 : index
    %c0_17 = arith.constant 0 : index
    %41 = vector.load %arg2[%c0_16, %c0_17] : memref<128x128xbf16, #tpu.memory_space<vmem>>, vector<128x128xbf16>
    %cst_18 = arith.constant dense<0.000000e+00> : vector<8x128xf32>
    %42 = tpu.matmul %40, %41, %cst_18 {dimension_numbers = #tpu.dot_dimension_numbers<[1], [0], [0], [1], [0, 0, 1, 1], [], []>} : vector<8x128xbf16>, vector<128x128xbf16>, vector<8x128xf32> -> vector<8x128xf32>
    %43 = vector.broadcast %4 : vector<8x1xf32> to vector<8x128xf32>
    %44 = arith.mulf %42, %43 : vector<8x128xf32>
    %cst_19 = arith.constant dense<0.000000e+00> : vector<128xf32>
    %45 = vector.multi_reduction <add>, %44, %cst_19 [0] : vector<8x128xf32> to vector<128xf32>
    %46 = vector.shape_cast %45 : vector<128xf32> to vector<1x128xf32>
    %47 = arith.mulf %44, %44 : vector<8x128xf32>
    %cst_20 = arith.constant dense<0.000000e+00> : vector<128xf32>
    %48 = vector.multi_reduction <add>, %47, %cst_20 [0] : vector<8x128xf32> to vector<128xf32>
    %49 = vector.shape_cast %48 : vector<128xf32> to vector<1x128xf32>
    %cst_21 = arith.constant 0.166666672 : f32
    %50 = vector.broadcast %cst_21 : f32 to vector<1x128xf32>
    %51 = arith.mulf %46, %50 : vector<1x128xf32>
    %cst_22 = arith.constant 0.166666672 : f32
    %52 = vector.broadcast %cst_22 : f32 to vector<1x128xf32>
    %53 = arith.mulf %49, %52 : vector<1x128xf32>
    %54 = arith.mulf %51, %51 : vector<1x128xf32>
    %55 = arith.subf %53, %54 : vector<1x128xf32>
    %cst_23 = arith.constant 0.000000e+00 : f32
    %56 = vector.broadcast %cst_23 : f32 to vector<1x128xf32>
    %57 = arith.maximumf %55, %56 : vector<1x128xf32>
    %cst_24 = arith.constant 9.99999974E-6 : f32
    %58 = vector.broadcast %cst_24 : f32 to vector<1x128xf32>
    %59 = arith.addf %57, %58 : vector<1x128xf32>
    %60 = math.rsqrt %59 : vector<1x128xf32>
    %61 = arith.mulf %7, %60 : vector<1x128xf32>
    %62 = arith.mulf %51, %61 : vector<1x128xf32>
    %63 = arith.subf %8, %62 : vector<1x128xf32>
    %64 = vector.broadcast %61 : vector<1x128xf32> to vector<8x128xf32>
    %65 = arith.mulf %42, %64 : vector<8x128xf32>
    %66 = vector.broadcast %63 : vector<1x128xf32> to vector<8x128xf32>
    %67 = arith.addf %65, %66 : vector<8x128xf32>
    %cst_25 = arith.constant 0.000000e+00 : f32
    %68 = vector.broadcast %cst_25 : f32 to vector<8x128xf32>
    %69 = arith.maximumf %67, %68 : vector<8x128xf32>
    %70 = arith.truncf %69 : vector<8x128xf32> to vector<8x128xbf16>
    %c0_26 = arith.constant 0 : index
    %c0_27 = arith.constant 0 : index
    %71 = vector.load %arg3[%c0_26, %c0_27] : memref<128x128xbf16, #tpu.memory_space<vmem>>, vector<128x128xbf16>
    %cst_28 = arith.constant dense<0.000000e+00> : vector<8x128xf32>
    %72 = tpu.matmul %70, %71, %cst_28 {dimension_numbers = #tpu.dot_dimension_numbers<[1], [0], [0], [1], [0, 0, 1, 1], [], []>} : vector<8x128xbf16>, vector<128x128xbf16>, vector<8x128xf32> -> vector<8x128xf32>
    %73 = vector.broadcast %9 : vector<1x128xf32> to vector<8x128xf32>
    %74 = arith.addf %72, %73 : vector<8x128xf32>
    %c0_29 = arith.constant 0 : index
    %c0_30 = arith.constant 0 : index
    %75 = vector.load %arg5[%c0_29, %c0_30] : memref<8x128xf32, #tpu.memory_space<vmem>>, vector<8x128xf32>
    tpu.vector_store %arg5[%c0_29, %c0_30], %74 {strides = array<i32>} : memref<8x128xf32, #tpu.memory_space<vmem>>, vector<8x128xf32>,
    return
  }
}

</mosaic_0001>

<bundles_post_ra>
// kernel: projection_mlp.1
= control target key start
LH: loop header
LB: loop body
LE: loop exit
PB: predicated region body
PF: predicated region fallthrough
CT: control target
= control target key end

     0   :  { %s1727_s0 = inlined_call_operand.vmem [shape: bf16[8,1024], index: 0, kind: input, shape index: {}]   ;;  %s1728_s1 = inlined_call_operand.vmem [shape: bf16[1024,128], index: 1, kind: input, shape index: {}]   ;;  %s1729_s2 = inlined_call_operand.vmem [shape: bf16[128,128], index: 2, kind: input, shape index: {}]   ;;  %s1730_s3 = inlined_call_operand.vmem [shape: bf16[128,128], index: 3, kind: input, shape index: {}]   ;;  %s1731_s4 = inlined_call_operand.vmem [shape: f32[8,128], index: 4, kind: input, shape index: {}]   ;;  %s1732_s5 = inlined_call_operand.hbm [shape: f32[8,128], index: 5, kind: output, shape index: {}]  }
   0x1   :  { %v1274_v0 = vld [vmem:[%s1728_s1 + $0x40] sm:$0xff]   ;;  %v1278_v4 = vld [vmem:[%s1728_s1 + $0x48] sm:$0xff]   ;;  %v1282_v8 = vld [vmem:[%s1728_s1 + $0x50] sm:$0xff]  }
   0x2   :  { %v1275_v1 = vld [vmem:[%s1728_s1 + $0xc0] sm:$0xff]   ;;  %1125 = vmatprep.subr.bf16.mxu0 %v1274_v0  ;;  %v1279_v5 = vld [vmem:[%s1728_s1 + $0xc8] sm:$0xff]   ;;  %v1283_v9 = vld [vmem:[%s1728_s1 + $0xd0] sm:$0xff]  }
   0x3   :  { %v1276_v2 = vld [vmem:[%s1728_s1] sm:$0xff]   ;;  %1147 = vmatprep.subr.bf16.mxu1 %v1275_v1  ;;  %v1280_v6 = vld [vmem:[%s1728_s1 + $0x8] sm:$0xff]   ;;  %v1284_v10 = vld [vmem:[%s1728_s1 + $0x10] sm:$0xff]  }
   0x4   :  { %v1277_v3 = vld [vmem:[%s1728_s1 + $0x80] sm:$0xff]   ;;  %1126 = vmatpush3.bf16.msra.mxu0 %v1276_v2  ;;  %v1281_v7 = vld [vmem:[%s1728_s1 + $0x88] sm:$0xff]   ;;  %v1285_v11 = vld [vmem:[%s1728_s1 + $0x90] sm:$0xff]  }
   0x5   :  { %1148 = vmatpush3.bf16.msra.mxu1 %v1277_v3  ;;  %1127 = vmatprep.subr.bf16.mxu0 %v1278_v4  ;;  %v1286_v12 = vld [vmem:[%s1728_s1 + $0x58] sm:$0xff]   ;;  %v1290_v16 = vld [vmem:[%s1728_s1 + $0x60] sm:$0xff]   ;;  %v1294_v20 = vld [vmem:[%s1728_s1 + $0x68] sm:$0xff]  }
   0x6   :  { %1149 = vmatprep.subr.bf16.mxu1 %v1279_v5  ;;  %v1287_v13 = vld [vmem:[%s1728_s1 + $0xd8] sm:$0xff]   ;;  %v1291_v17 = vld [vmem:[%s1728_s1 + $0xe0] sm:$0xff]   ;;  %v1295_v21 = vld [vmem:[%s1728_s1 + $0xe8] sm:$0xff]  }
   0x7   :  { %v1288_v14 = vld [vmem:[%s1728_s1 + $0x18] sm:$0xff]   ;;  %v1292_v18 = vld [vmem:[%s1728_s1 + $0x20] sm:$0xff]   ;;  %v1296_v22 = vld [vmem:[%s1728_s1 + $0x28] sm:$0xff]  }
   0x8   :  { %1128 = vmatpush3.bf16.msra.mxu0 %v1280_v6  ;;  %v1289_v15 = vld [vmem:[%s1728_s1 + $0x98] sm:$0xff]   ;;  %v1293_v19 = vld [vmem:[%s1728_s1 + $0xa0] sm:$0xff]   ;;  %v1297_v23 = vld [vmem:[%s1728_s1 + $0xa8] sm:$0xff]  }
   0x9   :  { %1150 = vmatpush3.bf16.msra.mxu1 %v1281_v7  ;;  %1129 = vmatprep.subr.bf16.mxu0 %v1282_v8  ;;  %v1298_v24 = vld [vmem:[%s1728_s1 + $0x70] sm:$0xff]   ;;  %v1302_v28 = vld [vmem:[%s1728_s1 + $0x78] sm:$0xff]   ;;  %v32_v32 = vld [vmem:[%s1727_s0] sm:$0xff] }
   0xa   :  { %1151 = vmatprep.subr.bf16.mxu1 %v1283_v9  ;;  %v1299_v25 = vld [vmem:[%s1728_s1 + $0xf0] sm:$0xff]   ;;  %v1303_v29 = vld [vmem:[%s1728_s1 + $0xf8] sm:$0xff]   ;;  %v33_v33 = vld [vmem:[%s1727_s0 + $0x8] sm:$0xff]  ;;  %v1036_v34 = vcombine.low %v32_v32, %v32_v32  ;;  %v1037_v35 = vcombine.high %v32_v32, %v32_v32 }
   0xb   :  { %v1300_v26 = vld [vmem:[%s1728_s1 + $0x30] sm:$0xff]   ;;  %v1304_v30 = vld [vmem:[%s1728_s1 + $0x38] sm:$0xff]   ;;  %v1038_v36 = vcombine.low %v33_v33, %v33_v33  ;;  %v1039_v37 = vcombine.high %v33_v33, %v33_v33  ;;  %v1310_v38 = vld [vmem:[%s1728_s1 + $0x140] sm:$0xff]  }
   0xc   :  { %1130 = vmatpush3.bf16.msra.mxu0 %v1284_v10  ;;  %v1301_v27 = vld [vmem:[%s1728_s1 + $0xb0] sm:$0xff]   ;;  %v1305_v31 = vld [vmem:[%s1728_s1 + $0xb8] sm:$0xff]   ;;  %v1311_v39 = vld [vmem:[%s1728_s1 + $0x1c0] sm:$0xff]   ;;  %608 = vmatprep.mubr.bf16.mxu0 %v1037_v35 }
   0xd   :  { %1152 = vmatpush3.bf16.msra.mxu1 %v1285_v11  ;;  %1131 = vmatprep.subr.bf16.mxu0 %v1286_v12  ;;  %v1312_v40 = vld [vmem:[%s1728_s1 + $0x100] sm:$0xff]   ;;  %v1314_v42 = vld [vmem:[%s1728_s1 + $0x148] sm:$0xff]   ;;  %v1318_v46 = vld [vmem:[%s1728_s1 + $0x150] sm:$0xff]  }
   0xe   :  { %1153 = vmatprep.subr.bf16.mxu1 %v1287_v13  ;;  %648 = vmatprep.mubr.bf16.mxu1 %v1039_v37  ;;  %v1313_v41 = vld [vmem:[%s1728_s1 + $0x180] sm:$0xff]   ;;  %v1315_v43 = vld [vmem:[%s1728_s1 + $0x1c8] sm:$0xff]   ;;  %v1319_v47 = vld [vmem:[%s1728_s1 + $0x1d0] sm:$0xff]  }
   0xf   :  { %v1316_v44 = vld [vmem:[%s1728_s1 + $0x108] sm:$0xff]   ;;  %v1320_v48 = vld [vmem:[%s1728_s1 + $0x110] sm:$0xff]   ;;  %v1322_v50 = vld [vmem:[%s1728_s1 + $0x158] sm:$0xff]  }
  0x10   :  { %1132 = vmatpush3.bf16.msra.mxu0 %v1288_v14  ;;  %v1317_v45 = vld [vmem:[%s1728_s1 + $0x188] sm:$0xff]   ;;  %v1321_v49 = vld [vmem:[%s1728_s1 + $0x190] sm:$0xff]   ;;  %v1323_v51 = vld [vmem:[%s1728_s1 + $0x1d8] sm:$0xff]  }
  0x11   :  { %1154 = vmatpush3.bf16.msra.mxu1 %v1289_v15  ;;  %1133 = vmatprep.subr.bf16.mxu0 %v1290_v16  ;;  %v1324_v52 = vld [vmem:[%s1728_s1 + $0x118] sm:$0xff]   ;;  %v1326_v54 = vld [vmem:[%s1728_s1 + $0x160] sm:$0xff]   ;;  %v1330_v58 = vld [vmem:[%s1728_s1 + $0x168] sm:$0xff]  }
  0x12   :  { %1155 = vmatprep.subr.bf16.mxu1 %v1291_v17  ;;  %v1325_v53 = vld [vmem:[%s1728_s1 + $0x198] sm:$0xff]   ;;  %v1327_v55 = vld [vmem:[%s1728_s1 + $0x1e0] sm:$0xff]   ;;  %v1331_v59 = vld [vmem:[%s1728_s1 + $0x1e8] sm:$0xff]  }
  0x13   :  { %v1328_v56 = vld [vmem:[%s1728_s1 + $0x120] sm:$0xff]   ;;  %v1332_v60 = vld [vmem:[%s1728_s1 + $0x128] sm:$0xff]   ;;  %v1334_v62 = vld [vmem:[%s1728_s1 + $0x170] sm:$0xff]  }
  0x14   :  { %1134 = vmatpush3.bf16.msra.mxu0 %v1292_v18  ;;  %v1329_v57 = vld [vmem:[%s1728_s1 + $0x1a0] sm:$0xff]   ;;  %v1333_v61 = vld [vmem:[%s1728_s1 + $0x1a8] sm:$0xff]   ;;  %v1335_v63 = vld [vmem:[%s1728_s1 + $0x1f0] sm:$0xff]  }
  0x15   :  { %1156 = vmatpush3.bf16.msra.mxu1 %v1293_v19  ;;  %1135 = vmatprep.subr.bf16.mxu0 %v1294_v20  ;;  %v1336_v0 = vld [vmem:[%s1728_s1 + $0x130] sm:$0xff]   ;;  %v1338_v2 = vld [vmem:[%s1728_s1 + $0x178] sm:$0xff]  }
  0x16   :  { %1157 = vmatprep.subr.bf16.mxu1 %v1295_v21  ;;  %v1337_v1 = vld [vmem:[%s1728_s1 + $0x1b0] sm:$0xff]   ;;  %v1339_v3 = vld [vmem:[%s1728_s1 + $0x1f8] sm:$0xff]  }
  0x17   :  { %v1340_v4 = vld [vmem:[%s1728_s1 + $0x138] sm:$0xff]   ;;  %v34_v6 = vld [vmem:[%s1727_s0 + $0x10] sm:$0xff] }
  0x18   :  { %1136 = vmatpush3.bf16.msra.mxu0 %v1296_v22  ;;  %v1341_v5 = vld [vmem:[%s1728_s1 + $0x1b8] sm:$0xff]   ;;  %v1040_v7 = vcombine.low %v34_v6, %v34_v6  ;;  %v1041_v8 = vcombine.high %v34_v6, %v34_v6 }
  0x19   :  { %1158 = vmatpush3.bf16.msra.mxu1 %v1297_v23  ;;  %1137 = vmatprep.subr.bf16.mxu0 %v1298_v24  ;;  %v35_v9 = vld [vmem:[%s1727_s0 + $0x18] sm:$0xff] }
  0x1a   :  { %1159 = vmatprep.subr.bf16.mxu1 %v1299_v25  ;;  %v1042_v10 = vcombine.low %v35_v9, %v35_v9  ;;  %v1043_v11 = vcombine.high %v35_v9, %v35_v9 }
  0x1c   :  { %1138 = vmatpush3.bf16.msra.mxu0 %v1300_v26 }
  0x1d   :  { %1160 = vmatpush3.bf16.msra.mxu1 %v1301_v27  ;;  %1139 = vmatprep.subr.bf16.mxu0 %v1302_v28 }
  0x1e   :  { %1161 = vmatprep.subr.bf16.mxu1 %v1303_v29 }
  0x20   :  { %1140 = vmatpush3.bf16.msra.mxu0 %v1304_v30 }
  0x21   :  { %1162 = vmatpush3.bf16.msra.mxu1 %v1305_v31  ;;  %1169 = vmatprep.subr.bf16.mxu0 %v1310_v38 }
  0x22   :  { %1191 = vmatprep.subr.bf16.mxu1 %v1311_v39 }
  0x23   :  { %609 = vmatmul.mubr.bf16.vlgmr.msra.gmra.mrb[0].mxu0 %v1036_v34 }
  0x24   :  { %649 = vmatmul.mubr.bf16.vlgmr.msra.gmra.mrb[0].mxu1 %v1038_v36  ;;  %1170 = vmatpush3.bf16.msra.mxu0 %v1312_v40 }
  0x25   :  { %1192 = vmatpush3.bf16.msra.mxu1 %v1313_v41  ;;  %1171 = vmatprep.subr.bf16.mxu0 %v1314_v42 }
  0x26   :  { %1193 = vmatprep.subr.bf16.mxu1 %v1315_v43  ;;  %688 = vmatprep.mubr.bf16.mxu0 %v1041_v8 }
  0x27   :  { %728 = vmatprep.mubr.bf16.mxu1 %v1043_v11 }
  0x28   :  { %1172 = vmatpush3.bf16.msra.mxu0 %v1316_v44 }
  0x29   :  { %1194 = vmatpush3.bf16.msra.mxu1 %v1317_v45  ;;  %1173 = vmatprep.subr.bf16.mxu0 %v1318_v46 }
  0x2a   :  { %1195 = vmatprep.subr.bf16.mxu1 %v1319_v47 }
  0x2c   :  { %1174 = vmatpush3.bf16.msra.mxu0 %v1320_v48 }
  0x2d   :  { %1196 = vmatpush3.bf16.msra.mxu1 %v1321_v49  ;;  %1175 = vmatprep.subr.bf16.mxu0 %v1322_v50 }
  0x2e   :  { %1197 = vmatprep.subr.bf16.mxu1 %v1323_v51 }
  0x30   :  { %1176 = vmatpush3.bf16.msra.mxu0 %v1324_v52 }
  0x31   :  { %1198 = vmatpush3.bf16.msra.mxu1 %v1325_v53  ;;  %1177 = vmatprep.subr.bf16.mxu0 %v1326_v54 }
  0x32   :  { %1199 = vmatprep.subr.bf16.mxu1 %v1327_v55 }
  0x34   :  { %1178 = vmatpush3.bf16.msra.mxu0 %v1328_v56 }
  0x35   :  { %1200 = vmatpush3.bf16.msra.mxu1 %v1329_v57  ;;  %1179 = vmatprep.subr.bf16.mxu0 %v1330_v58 }
  0x36   :  { %1201 = vmatprep.subr.bf16.mxu1 %v1331_v59 }
  0x38   :  { %1180 = vmatpush3.bf16.msra.mxu0 %v1332_v60 }
  0x39   :  { %1202 = vmatpush3.bf16.msra.mxu1 %v1333_v61  ;;  %1181 = vmatprep.subr.bf16.mxu0 %v1334_v62 }
  0x3a   :  { %1203 = vmatprep.subr.bf16.mxu1 %v1335_v63 }
  0x3c   :  { %1182 = vmatpush3.bf16.msra.mxu0 %v1336_v0 }
  0x3d   :  { %1204 = vmatpush3.bf16.msra.mxu1 %v1337_v1  ;;  %1183 = vmatprep.subr.bf16.mxu0 %v1338_v2 }
  0x3e   :  { %1205 = vmatprep.subr.bf16.mxu1 %v1339_v3 }
  0x40   :  { %1184 = vmatpush3.bf16.msra.mxu0 %v1340_v4 }
  0x41   :  { %1206 = vmatpush3.bf16.msra.mxu1 %v1341_v5 }
  0x43   :  { %689 = vmatmul.mubr.bf16.vlgmr.msra.gmra.mrb[4].mxu0 %v1040_v7 }
  0x44   :  { %729 = vmatmul.mubr.bf16.vlgmr.msra.gmra.mrb[4].mxu1 %v1042_v10 }
  0x45   :  { %10 = vsyncpa [#allocation3], 0  ;;  %v1390_v12 = vmov 0.0   ;;  %v1346_v13 = vld [vmem:[%s1729_s2] sm:$0xff]   ;;  %v1347_v14 = vld [vmem:[%s1729_s2 + $0x8] sm:$0xff]   ;;  %vm1391_vm0 = vmmov 0   ;;  %v22_v32 = vlaneseq }
  0x46   :  { %1231 = vmatprep.subr.bf16.mxu0 %v1390_v12  ;;  %1251 = vmatprep.subr.bf16.mxu1 %v1390_v12  ;;  %v1348_v15 = vld [vmem:[%s1729_s2 + $0x10] sm:$0xff]   ;;  %v1349_v16 = vld [vmem:[%s1729_s2 + $0x18] sm:$0xff]   ;;  %v1350_v17 = vld [vmem:[%s1729_s2 + $0x20] sm:$0xff]   ;;  %s1392_s15 = smov [#allocation2]  }
  0x47   :  { %1232 = vmatpush3.bf16.msra.mxu0 %v1346_v13  ;;  %v1351_v18 = vld [vmem:[%s1729_s2 + $0x28] sm:$0xff]   ;;  %v1352_v19 = vld [vmem:[%s1729_s2 + $0x30] sm:$0xff]   ;;  %v1353_v20 = vld [vmem:[%s1729_s2 + $0x38] sm:$0xff]   ;;  %1247 = vmatprep.mubr.msk.bf16.mxu0 %vm1391_vm0, %v1390_v12  ;;  %v23_v33 = vshrl.u32 %v22_v32, 7  ;;  %s1027_s16 = sshll.u32 %s1392_s15, 4  ;;  %s1028_s16 = int_to_ptr.vmem [resolvable:$true] %s1027_s16 }
  0x48   :  { %1233 = vmatprep.subr.bf16.mxu0 %v1390_v12  ;;  %1267 = vmatprep.mubr.msk.bf16.mxu1 %vm1391_vm0, %v1390_v12  ;;  %v27_v3 = vld [vmem:[%s1731_s4] sm:$0x1]  ;;  %v28_v7 = vld [vmem:[%s1731_s4 + $0x1] sm:$0x1]  ;;  %s1366_s17 = scalar_lea.vmem %s1028_s16, 128  ;;  %p1371_p1 = scmp.lt.s32.totalorder %s1028_s16, %s1028_s16 }
  0x49   :  { %vm24_vm1 = vcmp.lt.s32.totalorder %v23_v33, 6  ;;  %v1666_v4 = vsub.s32 0, %v23_v33  ;;  %p1367_p0 = scmp.ne.s32.totalorder %s1028_s16, %s1366_s17  ;;  %p1372_p2 = scmp.lt.s32.totalorder %s1366_s17, %s1366_s17 }
  0x4a   :  { %v1035_v45 = vsel %vm24_vm1, 1.0, %v1390_v12 }
  0x4b   :  { %1234 = vmatpush3.bf16.msra.mxu0 %v1347_v14  ;;  %p1373_p3 = por %p1372_p2, %p1371_p1 }
  0x4c   :  { %1235 = vmatprep.subr.bf16.mxu0 %v1390_v12 }
  0x4d   :  { %p1374_p4 = pnand %p1373_p3, %p1367_p0 }
  0x4f   :  { %1236 = vmatpush3.bf16.msra.mxu0 %v1348_v15 }
  0x50   :  { %1237 = vmatprep.subr.bf16.mxu0 %v1390_v12 }
  0x53   :  { %1238 = vmatpush3.bf16.msra.mxu0 %v1349_v16 }
  0x54   :  { %1239 = vmatprep.subr.bf16.mxu0 %v1390_v12 }
  0x57   :  { %1240 = vmatpush3.bf16.msra.mxu0 %v1350_v17  ;;  %v1354_v17 = vld [vmem:[%s1730_s3] sm:$0xff]  }
  0x58   :  { %1241 = vmatprep.subr.bf16.mxu0 %v1390_v12  ;;  %1252 = vmatpush3.bf16.msra.mxu1 %v1354_v17 }
  0x59   :  { %1253 = vmatprep.subr.bf16.mxu1 %v1390_v12 }
  0x5b   :  { %1242 = vmatpush3.bf16.msra.mxu0 %v1351_v18  ;;  %v1355_v18 = vld [vmem:[%s1730_s3 + $0x8] sm:$0xff]  }
  0x5c   :  { %1243 = vmatprep.subr.bf16.mxu0 %v1390_v12  ;;  %1254 = vmatpush3.bf16.msra.mxu1 %v1355_v18 }
  0x5d   :  { %1255 = vmatprep.subr.bf16.mxu1 %v1390_v12 }
  0x5f   :  { %1244 = vmatpush3.bf16.msra.mxu0 %v1352_v19  ;;  %v1356_v19 = vld [vmem:[%s1730_s3 + $0x10] sm:$0xff]  }
  0x60   :  { %1245 = vmatprep.subr.bf16.mxu0 %v1390_v12  ;;  %1256 = vmatpush3.bf16.msra.mxu1 %v1356_v19 }
  0x61   :  { %1257 = vmatprep.subr.bf16.mxu1 %v1390_v12 }
  0x63   :  { %1246 = vmatpush3.bf16.msra.mxu0 %v1353_v20  ;;  %v1357_v20 = vld [vmem:[%s1730_s3 + $0x18] sm:$0xff]  }
  0x64   :  { %1258 = vmatpush3.bf16.msra.mxu1 %v1357_v20 }
  0x65   :  { %1259 = vmatprep.subr.bf16.mxu1 %v1390_v12 }
  0xf6   :  { %v1141_v21 = vpop.f32.mrb[0].mxu0 }
  0xf7   :  { %v1163_v22 = vpop.f32.mrb[0].mxu1  ;;  %v1142_v23 = vpop.f32.mrb[1].mxu0 }
  0xf8   :  { %v1164_v24 = vpop.f32.mrb[1].mxu1  ;;  %v1143_v25 = vadd.f32 %v1142_v23, %v1141_v21  ;;  %v1144_v27 = vpop.f32.mrb[2].mxu0  ;;  %v1358_v21 = vld [vmem:[%s1730_s3 + $0x20] sm:$0xff]   ;;  %v1360_v23 = vld [vmem:[%s1730_s3 + $0x30] sm:$0xff]  }
  0xf9   :  { %v1165_v26 = vadd.f32 %v1164_v24, %v1163_v22  ;;  %v1166_v28 = vpop.f32.mrb[2].mxu1  ;;  %v1145_v29 = vpop.f32.mrb[3].mxu0  ;;  %1260 = vmatpush3.bf16.msra.mxu1 %v1358_v21  ;;  %v1359_v22 = vld [vmem:[%s1730_s3 + $0x28] sm:$0xff]   ;;  %v1361_v24 = vld [vmem:[%s1730_s3 + $0x38] sm:$0xff]  }
  0xfa   :  { %v1167_v30 = vpop.f32.mrb[3].mxu1  ;;  %1261 = vmatprep.subr.bf16.mxu1 %v1390_v12 }
  0xfb   :  { %v651_v31 = vadd.f32 %v1165_v26, %v1143_v25 }
  0xfd   :  { %1262 = vmatpush3.bf16.msra.mxu1 %v1359_v22 }
  0xfe   :  { %1263 = vmatprep.subr.bf16.mxu1 %v1390_v12 }
 0x101   :  { %1264 = vmatpush3.bf16.msra.mxu1 %v1360_v23 }
 0x102   :  { %1265 = vmatprep.subr.bf16.mxu1 %v1390_v12 }
 0x105   :  { %1266 = vmatpush3.bf16.msra.mxu1 %v1361_v24 }
 0x116   :  { %v1185_v34 = vpop.f32.mrb[4].mxu0 }
 0x117   :  { %v1207_v35 = vpop.f32.mrb[4].mxu1  ;;  %v1186_v36 = vpop.f32.mrb[5].mxu0 }
 0x118   :  { %v1208_v37 = vpop.f32.mrb[5].mxu1  ;;  %v1187_v38 = vadd.f32 %v1186_v36, %v1185_v34  ;;  %v1188_v40 = vpop.f32.mrb[6].mxu0 }
 0x119   :  { %v1209_v39 = vadd.f32 %v1208_v37, %v1207_v35  ;;  %v1210_v41 = vpop.f32.mrb[6].mxu1  ;;  %v1189_v42 = vpop.f32.mrb[7].mxu0 }
 0x11a   :  { %v1211_v43 = vpop.f32.mrb[7].mxu1  ;;  %v691_v44 = vadd.f32 %v1187_v38, %v651_v31 }
 0x11c   :  { %v731_v46 = vadd.f32 %v1209_v39, %v691_v44 }
 0x11e   :  { %v736_v47 = vmul.f32 %v1035_v45, %v731_v46 }
 0x120   :  { %v737_v48 = vrot.slane %v736_v47, 4  ;;  %v743_v49 = vmul.f32 %v736_v47, %v736_v47 }
 0x122   :  { %v738_v50 = vadd.f32 %v737_v48, %v736_v47  ;;  %v744_v51 = vrot.slane %v743_v49, 4  ;;  %v29_v48 = vld [vmem:[%s1731_s4 + $0x2] sm:$0x1] }
 0x124   :  { %v739_v52 = vrot.slane %v738_v50, 2  ;;  %v745_v53 = vadd.f32 %v744_v51, %v743_v49  ;;  %v30_v51 = vld [vmem:[%s1731_s4 + $0x3] sm:$0x1] }
 0x126   :  { %v740_v54 = vadd.f32 %v739_v52, %v738_v50  ;;  %v746_v55 = vrot.slane %v745_v53, 2 }
 0x128   :  { %v741_v56 = vrot.slane %v740_v54, 1  ;;  %v747_v57 = vadd.f32 %v746_v55, %v745_v53 }
 0x12a   :  { %v742_v58 = vadd.f32 %v741_v56, %v740_v54  ;;  %v748_v59 = vrot.slane %v747_v57, 1 }
 0x12c   :  { %v749_v60 = vadd.f32 %v748_v59, %v747_v57  ;;  %v750_v61 = vmul.f32 0.16666667, %v742_v58 }
 0x12e   :  { %v751_v62 = vmul.f32 0.16666667, %v749_v60  ;;  %v752_v63 = vmul.f32 %v750_v61, %v750_v61  ;;  %v1116_v60 = vld [vmem:[%s1731_s4 + $0x4] ss:$0 sm:$0xff] }
 0x130   :  { %v753_v0 = vsub.f32 %v751_v62, %v752_v63 }
 0x132   :  { %v754_v1 = vmax.f32 %v753_v0, 0.0 }
 0x134   :  { %v755_v2 = vadd.f32 1e-05, %v754_v1 }
 0x136   :  { %1362 = vrsqrt.f32 %v755_v2 }
 0x140   :  { %v1363_v5 = vpop.eup %1362 }
 0x141   :  { %v757_v6 = vmul.f32 %v1363_v5, %v27_v3 }
 0x143   :  { %v758_v8 = vmul.f32 %v757_v6, %v750_v61  ;;  %v763_v9 = vrot.slane %v757_v6, %v1666_v4 }
 0x145   :  { %v759_v10 = vsub.f32 %v28_v7, %v758_v8  ;;  %v764_v11 = vmul.f32 %v763_v9, %v731_v46 }
 0x147   :  { %v768_v13 = vrot.slane %v759_v10, %v1666_v4 }
 0x149   :  { %v769_v14 = vadd.f32 %v768_v13, %v764_v11 }
 0x14b   :  { %v770_v15 = vmax.f32 %v769_v14, 0.0 }
 0x14d   :  { %v771_v16 = vpack.c.bf16 %v770_v15, %v770_v15 }
 0x14f   :  { %1248 = vmatmul.mubr.bf16.vlgmr.msra.gmra.mrb[8].mxu0 %v771_v16 }
 0x222   :  { %v870_v25 = vpop.f32.mrb[8].mxu0 }
 0x223   :  { %v876_v26 = vmul.f32 %v1035_v45, %v870_v25  ;;  %v1249_v27 = vpop.f32.mrb[9].mxu0 }
 0x224   :  { %v873_v28 = vpop.f32.mrb[10].mxu0 }
 0x225   :  { %v877_v29 = vrot.slane %v876_v26, 4  ;;  %v883_v30 = vmul.f32 %v876_v26, %v876_v26  ;;  %v1250_v31 = vpop.f32.mrb[11].mxu0 }
 0x227   :  { %v878_v32 = vadd.f32 %v877_v29, %v876_v26  ;;  %v884_v33 = vrot.slane %v883_v30, 4 }
 0x229   :  { %v879_v34 = vrot.slane %v878_v32, 2  ;;  %v885_v35 = vadd.f32 %v884_v33, %v883_v30 }
 0x22b   :  { %v880_v36 = vadd.f32 %v879_v34, %v878_v32  ;;  %v886_v37 = vrot.slane %v885_v35, 2 }
 0x22d   :  { %v881_v38 = vrot.slane %v880_v36, 1  ;;  %v887_v12 = vadd.f32 %v886_v37, %v885_v35 }
 0x22f   :  { %v882_v39 = vadd.f32 %v881_v38, %v880_v36  ;;  %v888_v40 = vrot.slane %v887_v12, 1 }
 0x231   :  { %v889_v41 = vadd.f32 %v888_v40, %v887_v12  ;;  %v890_v42 = vmul.f32 0.16666667, %v882_v39 }
 0x233   :  { %v891_v43 = vmul.f32 0.16666667, %v889_v41  ;;  %v892_v44 = vmul.f32 %v890_v42, %v890_v42 }
 0x235   :  { %v893_v45 = vsub.f32 %v891_v43, %v892_v44 }
 0x237   :  { %v894_v46 = vmax.f32 %v893_v45, 0.0 }
 0x239   :  { %v895_v47 = vadd.f32 1e-05, %v894_v46 }
 0x23b   :  { %1364 = vrsqrt.f32 %v895_v47 }
 0x245   :  { %v1365_v49 = vpop.eup %1364 }
 0x246   :  { %v897_v50 = vmul.f32 %v1365_v49, %v29_v48 }
 0x248   :  { %v898_v52 = vmul.f32 %v897_v50, %v890_v42  ;;  %v903_v53 = vrot.slane %v897_v50, %v1666_v4 }
 0x24a   :  { %v899_v54 = vsub.f32 %v30_v51, %v898_v52  ;;  %v904_v55 = vmul.f32 %v903_v53, %v870_v25 }
 0x24c   :  { %v908_v56 = vrot.slane %v899_v54, %v1666_v4 }
 0x24e   :  { %v909_v57 = vadd.f32 %v908_v56, %v904_v55 }
 0x250   :  { %v910_v58 = vmax.f32 %v909_v57, 0.0 }
 0x252   :  { %v911_v59 = vpack.c.bf16 %v910_v58, %v910_v58 }
 0x254   :  { %1268 = vmatmul.mubr.bf16.vlgmr.msra.gmra.mrb[8].mxu1 %v911_v59 }
 0x327   :  { %v1014_v61 = vpop.f32.mrb[8].mxu1 }
 0x328   :  { %v1015_v62 = vadd.f32 %v1116_v60, %v1014_v61  ;;  %v1269_v63 = vpop.f32.mrb[9].mxu1 }
 0x329   :  { %v1017_v0 = vpop.f32.mrb[10].mxu1 }
 0x32a   :  { %1020 = vst [vmem:[#allocation2] sm:$0xff] %v1015_v62  ;;  %v1270_v1 = vpop.f32.mrb[11].mxu1 }
 0x32b   :  { %1377 = shalt.err (!%p1374_p4)
}
 0x32c   :  { %s1378_s4 = scalar_lea.hbm %s1732_s5, 128 }
 0x32d   :  { %p1379_p5 = scmp.ne.s32.totalorder %s1732_s5, %s1378_s4  ;;  %p1382_p6 = scmp.lt.u32.totalorder %s1378_s4, %s1732_s5 }
 0x32f   :  { %p1384_p7 = pnand %p1382_p6, %p1379_p5 }
 0x331   :  { %1387 = shalt.err (!%p1384_p7)
}
 0x332   :  { %1030 = dma.vmem_to_hbm [thread:$0]  %s1028_s16, 128, %s1732_s5, [#allocation3]  }
 0x333   :  { %1388 = dma.done.wait [#allocation3], 128  }
 0x334   :  { %1389 = vsyncadd [#allocation3], 4294967168 }
 0x335   :  { %1034 = vsyncpa [#allocation3], 1 }

</bundles_post_ra>
